<compile_context>
chip_gen: v6e
topology: v6e:2x2x1
jax: 0.10.0
libtpu: 0.0.40
codegen_flags: <defaults>
</compile_context>

<pallas_src>
import math

import jax
import jax.numpy as jnp
from jax.experimental import pallas as pl
from jax.experimental.pallas import tpu as pltpu

_GELU_C = math.sqrt(2.0 / math.pi)
_MIB = 1 << 20
_I_CHUNK = 512  # target width of the in-kernel intermediate-dim chunks


def _cdiv(a, b):
    return (a + b - 1) // b


def _round_up(x, m):
    return _cdiv(x, m) * m


# ---------------------------------------------------------------------------
# Hardware capabilities (generation-aware policy)
# ---------------------------------------------------------------------------
def _tpu_caps():
    kind = ""
    try:
        kind = jax.devices()[0].device_kind.lower()
    except Exception:
        pass

    vmem_cap = None
    try:
        vmem_cap = int(pltpu.get_tpu_info().vmem_capacity_bytes)
    except Exception:
        vmem_cap = None

    is_v7 = "v7" in kind
    is_v5e = ("v5 lite" in kind) or ("v5e" in kind) or ("v5litepod" in kind)
    has_bf16_vpu = ("v6" in kind) or is_v7          # v6e / v7x: bf16 VPU+EUP

    if vmem_cap is None:
        vmem_cap = 64 * _MIB if is_v7 else 128 * _MIB

    # Leave headroom for Mosaic internal scratch / semaphores / regalloc spill:
    # ~52 MiB usable on v7x (64 MiB physical), ~108 MiB on v5e/v6e (128 MiB).
    vmem_budget = max(min(vmem_cap - 12 * _MIB, int(vmem_cap * 0.85)),
                      24 * _MIB)

    return {
        "kind": kind,
        "vmem_cap": vmem_cap,
        "vmem_budget": vmem_budget,
        "has_bf16_vpu": has_bf16_vpu,
        "num_tc": 2 if is_v7 else 1,                # v7x = 2 TensorCores/chip
        "mxu_granule": 256 if has_bf16_vpu else 128,  # v6e/v7x MXU is 2x256^2
    }


# ---------------------------------------------------------------------------
# Kernels
# ---------------------------------------------------------------------------
def _gelu_new(h):
    # NewGELUActivation: 0.5*h*(1 + tanh(sqrt(2/pi)*(h + 0.044715*h^3)))
    # (tanh goes to the EUP slot; stays in h's dtype — bf16 on v6e/v7x.)
    h2 = h * h
    return 0.5 * h * (1.0 + jnp.tanh(_GELU_C * (h + 0.044715 * (h2 * h))))


def _make_fast_kernel(tile_i, chunk, gelu_dtype):
    """num_k == 1: weights fully resident, result written directly to o_ref."""
    n_chunks = tile_i // chunk

    def kernel(x_ref, w1_ref, b1_ref, w2_ref, b2_ref, o_ref):
        x = x_ref[...]
        acc = None
        # Static (fully unrolled) chunk loop: per-chunk dot1 -> GELU -> dot2
        # dependences let the scheduler overlap MXU work of chunk j+1 with the
        # VPU/EUP GELU of chunk j, and bound live f32 temps to (tile_m, chunk).
        for c in range(n_chunks):
            lo = c * chunk
            h = jnp.dot(x, w1_ref[:, lo:lo + chunk],
                        preferred_element_type=jnp.float32)
            h = (h + b1_ref[:, lo:lo + chunk]).astype(gelu_dtype)
            g = _gelu_new(h)
            p = jnp.dot(g.astype(w2_ref.dtype), w2_ref[lo:lo + chunk, :],
                        preferred_element_type=jnp.float32)
            acc = p if acc is None else acc + p
        # dropout: identity (inference)
        o_ref[...] = (acc + b2_ref[...]).astype(o_ref.dtype)

    return kernel


def _make_reduce_kernel(tile_i, chunk, gelu_dtype):
    """num_k > 1: grid axis 1 reduces over I with an f32 accumulator scratch."""
    n_chunks = tile_i // chunk

    def kernel(x_ref, w1_ref, b1_ref, w2_ref, b2_ref, o_ref, acc_ref):
        k = pl.program_id(1)

        @pl.when(k == 0)
        def _():
            acc_ref[...] = jnp.zeros_like(acc_ref)

        x = x_ref[...]
        acc = None
        for c in range(n_chunks):
            lo = c * chunk
            h = jnp.dot(x, w1_ref[:, lo:lo + chunk],
                        preferred_element_type=jnp.float32)
            h = (h + b1_ref[:, lo:lo + chunk]).astype(gelu_dtype)
            g = _gelu_new(h)
            p = jnp.dot(g.astype(w2_ref.dtype), w2_ref[lo:lo + chunk, :],
                        preferred_element_type=jnp.float32)
            acc = p if acc is None else acc + p
        acc_ref[...] += acc

        @pl.when(k == pl.num_programs(1) - 1)
        def _():
            # dropout: identity (inference)
            o_ref[...] = (acc_ref[...] + b2_ref[...]).astype(o_ref.dtype)

    return kernel


# ---------------------------------------------------------------------------
# Tiling / VMEM budgeting
# ---------------------------------------------------------------------------
def _vmem_need_bytes(tile_m, H, tile_i, num_k, x_bytes, w_bytes, o_bytes):
    """Rough VMEM footprint of one grid step (pipeline buffers + scratch)."""
    w_bufs = 1 if num_k == 1 else 2          # resident weights single-buffered
    chunk = min(tile_i, _I_CHUNK)
    need = 2 * tile_m * H * x_bytes          # x tile (double-buffered)
    need += 2 * tile_m * H * o_bytes         # out tile (double-buffered)
    need += w_bufs * 2 * H * tile_i * w_bytes    # W1 + W2 blocks
    need += w_bufs * (tile_i + H) * w_bytes      # b1 + b2 blocks
    need += tile_m * H * 4                   # f32 accumulator carry
    if num_k > 1:
        need += tile_m * H * 4               # extra f32 acc_ref scratch
    need += 3 * tile_m * chunk * 4           # ~3 live f32 GELU intermediates
    return need


def _pick_chunk(tile_i):
    if tile_i <= _I_CHUNK:
        return tile_i
    for c in (512, 384, 256, 128):
        if tile_i % c == 0:
            return c
    return tile_i


def _pick_tiles(M, H, I, x_bytes, w_bytes, o_bytes, tile_m, tile_i, caps):
    # Sublane granule: 8 rows for 4-byte dtypes, 16 for bf16, 32 for 8-bit.
    granule = max(8, 32 // max(1, x_bytes))
    budget = caps["vmem_budget"]
    mxu_g = caps["mxu_granule"]

    def _clamp_rows(base):
        t = base
        if caps["num_tc"] >= 2 and M > granule:
            # megacore: keep >= num_tc row tiles so both TensorCores get work
            t = min(t, _round_up(_cdiv(M, caps["num_tc"]), granule))
        return max(granule, min(_round_up(t, granule), _round_up(M, granule)))

    if tile_m is not None:
        tile_m = max(granule, _round_up(tile_m, granule))

    # Candidate intermediate tiles: full I, then lane-aligned halvings.
    if tile_i is not None:
        if tile_i != I and (I % tile_i != 0 or tile_i % 128 != 0):
            raise ValueError("tile_i must divide I and be a multiple of 128 "
                             "(or equal I)")
        ti_cands = [tile_i]
    else:
        ti_cands = [I]
        t = I
        while t % 2 == 0 and (t // 2) % 128 == 0 and t // 2 >= 128:
            t //= 2
            ti_cands.append(t)

    # 1) Resident-weight fast path (no reduction grid axis).
    tm_fast = tile_m if tile_m is not None else _clamp_rows(256)
    if ti_cands[0] == I:
        need = _vmem_need_bytes(tm_fast, H, I, 1, x_bytes, w_bytes, o_bytes)
        if need <= budget or len(ti_cands) == 1:
            return tm_fast, I, 1, need

    # 2) Reduction over I: weights are re-streamed per row tile, so use a big
    #    row tile to stay above the HBM/MXU crossover; prefer MXU-granular
    #    contraction slices (256 on v6e/v7x, 128 on v5e).
    tm = tile_m if tile_m is not None else _clamp_rows(768)
    red_cands = [t for t in ti_cands if t != I] or ti_cands
    pref = [t for t in red_cands if t % mxu_g == 0] or red_cands

    best = None
    while True:
        for t in pref:
            nk = I // t
            need = _vmem_need_bytes(tm, H, t, nk, x_bytes, w_bytes, o_bytes)
            if need <= budget:
                return tm, t, nk, need
            best = (tm, t, nk, need)
        if tm <= granule:
            break
        tm = max(granule, _round_up(_cdiv(tm, 2), granule))
    # Nothing fits the budget even at the smallest row tile: best effort
    # (vmem_limit is raised toward physical VMEM in the wrapper).
    return best


# ---------------------------------------------------------------------------
# Wrapper
# ---------------------------------------------------------------------------
def mlp_forward(x, w1, b1, w2, b2, *, tile_m=None, tile_i=None):
    """Fused ViT MLP forward: gelu_new(x @ W1 + b1) @ W2 + b2.

    x: (B, S, H); w1: (H, I); b1: (I,); w2: (I, H); b2: (H,).
    For best MXU throughput pass x / w1 / w2 in bfloat16 (cast once, outside
    this call); accumulation is always f32.  H and I should ideally be
    multiples of 128 (true for real ViT configs) to avoid masked stores.
    """
    B, S, H = x.shape
    I = w1.shape[1]
    assert w1.shape == (H, I) and w2.shape == (I, H)
    assert b1.shape == (I,) and b2.shape == (H,)

    M = B * S
    x2 = x.reshape(M, H)
    b1_2d = b1.reshape(1, I)
    b2_2d = b2.reshape(1, H)

    caps = _tpu_caps()
    # bf16 GELU only where the VPU/EUP have native bf16 AND operands are bf16.
    gelu_dtype = (jnp.bfloat16
                  if caps["has_bf16_vpu"] and w2.dtype == jnp.bfloat16
                  else jnp.float32)

    tile_m, tile_i, num_k, need = _pick_tiles(
        M, H, I, x2.dtype.itemsize, w1.dtype.itemsize, x.dtype.itemsize,
        tile_m, tile_i, caps)
    chunk = _pick_chunk(tile_i)

    num_m = _cdiv(M, tile_m)
    m_pad = num_m * tile_m
    if m_pad != M:  # ragged rows: zero-pad, slice the tail off afterwards
        x2 = jnp.pad(x2, ((0, m_pad - M), (0, 0)))

    # Raise the scoped-VMEM limit above the defaults when needed, but always
    # stay 8 MiB below physical VMEM (compiler-internal scratch headroom).
    vmem_limit = int(min(max(int(need * 1.2) + 2 * _MIB, 32 * _MIB),
                         max(caps["vmem_cap"] - 8 * _MIB, 24 * _MIB)))

    # Advisory cost hint for XLA's scheduler around the custom call.
    w_bytes = w1.dtype.itemsize
    w_reps = 1 if num_k == 1 else num_m        # weights re-streamed per row tile
    cost = pl.CostEstimate(
        flops=4 * m_pad * H * I,
        transcendentals=m_pad * I,
        bytes_accessed=int(m_pad * H * (x2.dtype.itemsize + x.dtype.itemsize)
                           + 2 * H * I * w_bytes * w_reps
                           + (I + H) * w_bytes),
    )

    if num_k == 1:
        # Fast path: weights fully resident (single-buffered), no scratch.
        kernel = _make_fast_kernel(tile_i, chunk, gelu_dtype)
        grid = (num_m,)
        in_specs = [
            pl.BlockSpec((tile_m, H), lambda i: (i, 0)),                   # x
            pl.BlockSpec((H, I), lambda i: (0, 0),
                         pipeline_mode=pl.Buffered(1)),                    # W1
            pl.BlockSpec((1, I), lambda i: (0, 0),
                         pipeline_mode=pl.Buffered(1)),                    # b1
            pl.BlockSpec((I, H), lambda i: (0, 0),
                         pipeline_mode=pl.Buffered(1)),                    # W2
            pl.BlockSpec((1, H), lambda i: (0, 0),
                         pipeline_mode=pl.Buffered(1)),                    # b2
        ]
        out_specs = pl.BlockSpec((tile_m, H), lambda i: (i, 0))
        scratch = []
        dims = ("parallel",)
    else:
        # Reduction path: grid axis 1 sweeps I; f32 accumulator scratch.
        kernel = _make_reduce_kernel(tile_i, chunk, gelu_dtype)
        grid = (num_m, num_k)
        in_specs = [
            pl.BlockSpec((tile_m, H), lambda i, k: (i, 0)),                # x
            pl.BlockSpec((H, tile_i), lambda i, k: (0, k)),                # W1
            pl.BlockSpec((1, tile_i), lambda i, k: (0, k)),                # b1
            pl.BlockSpec((tile_i, H), lambda i, k: (k, 0)),                # W2
            pl.BlockSpec((1, H), lambda i, k: (0, 0),
                         pipeline_mode=pl.Buffered(1)),                    # b2
        ]
        out_specs = pl.BlockSpec((tile_m, H), lambda i, k: (i, 0))
        scratch = [pltpu.VMEM((tile_m, H), jnp.float32)]
        dims = ("parallel", "arbitrary")

    out2 = pl.pallas_call(
        kernel,
        out_shape=jax.ShapeDtypeStruct((m_pad, H), x.dtype),
        grid_spec=pltpu.PrefetchScalarGridSpec(
            num_scalar_prefetch=0,
            grid=grid,
            in_specs=in_specs,
            out_specs=out_specs,
            scratch_shapes=scratch,
        ),
        compiler_params=pltpu.CompilerParams(
            dimension_semantics=dims,
            vmem_limit_bytes=vmem_limit,
        ),
        cost_estimate=cost,
    )(x2, w1, b1_2d, w2, b2_2d)

    if m_pad != M:
        out2 = out2[:M]
    return out2.reshape(B, S, H)


# ---------------------------------------------------------------------------
# Reference + demo
# ---------------------------------------------------------------------------
def _init_linear(key, fan_in, fan_out, dtype=jnp.float32):
    """nn.Linear-style init (uniform +/- 1/sqrt(fan_in)); weight returned
    pre-transposed to (fan_in, fan_out) for x @ W."""
    kw, kb = jax.random.split(key)
    bound = 1.0 / math.sqrt(fan_in)
    w = jax.random.uniform(kw, (fan_in, fan_out), dtype, minval=-bound, maxval=bound)
    b = jax.random.uniform(kb, (fan_out,), dtype, minval=-bound, maxval=bound)
    return w, b


def _reference(x, w1, b1, w2, b2):
    h = jnp.einsum("bsh,hi->bsi", x, w1) + b1
    g = 0.5 * h * (1.0 + jnp.tanh(_GELU_C * (h + 0.044715 * h ** 3)))
    return jnp.einsum("bsi,ih->bsh", g, w2) + b2


if __name__ == "__main__":
    # Small config consistent with the module: hidden_size=32, intermediate=64
    batch, seq, hidden, intermediate = 2, 8, 32, 64

    key = jax.random.PRNGKey(0)
    kx, k1, k2 = jax.random.split(key, 3)

    x = jax.random.normal(kx, (batch, seq, hidden), jnp.float32)
    w1, b1 = _init_linear(k1, hidden, intermediate)
    w2, b2 = _init_linear(k2, intermediate, hidden)
    ref = _reference(x, w1, b1, w2, b2)

    # 1) default tiling (resident weights, no-scratch fast path)
    out = jax.block_until_ready(mlp_forward(x, w1, b1, w2, b2))
    assert out.shape == (batch, seq, hidden)
    assert jnp.allclose(out, ref, atol=1e-5, rtol=1e-5)

    # 2) multi-step row grid (exercises the parallel M axis / pipelining path)
    out_m = jax.block_until_ready(mlp_forward(x, w1, b1, w2, b2, tile_m=8))
    assert jnp.allclose(out_m, ref, atol=1e-5, rtol=1e-5)

    # 3) ragged M path (tile_m does not divide M -> zero-pad + slice)
    out_pad = jax.block_until_ready(mlp_forward(x, w1, b1, w2, b2, tile_m=24))
    assert jnp.allclose(out_pad, ref, atol=1e-5, rtol=1e-5)

    # 4) reduction grid axis over I (f32 accumulator scratch across k steps)
    interm2 = 256
    w1b, b1b = _init_linear(k1, hidden, interm2)
    w2b, b2b = _init_linear(k2, interm2, hidden)
    out_k = jax.block_until_ready(mlp_forward(x, w1b, b1b, w2b, b2b, tile_i=128))
    ref_k = _reference(x, w1b, b1b, w2b, b2b)
    assert jnp.allclose(out_k, ref_k, atol=1e-5, rtol=1e-5)

    # 5) bf16 operands with f32 accumulation (recommended production dtype;
    #    GELU runs in bf16 on v6e/v7x, f32 on v5e).
    bf = jnp.bfloat16
    out_bf = jax.block_until_ready(
        mlp_forward(x.astype(bf), w1.astype(bf), b1.astype(bf),
                    w2.astype(bf), b2.astype(bf)))
    assert out_bf.dtype == bf
    assert jnp.allclose(out_bf.astype(jnp.float32), ref, atol=5e-2, rtol=5e-2)

    print("KERNEL_OK")
</pallas_src>

<mosaic_0001>
module attributes {stable_mosaic.version = 11 : i64} {
  func.func @kernel(%arg0: i32, %arg1: memref<16x32xf32, #tpu.memory_space<vmem>>, %arg2: memref<32x64xf32, #tpu.memory_space<vmem>>, %arg3: memref<1x64xf32, #tpu.memory_space<vmem>>, %arg4: memref<64x32xf32, #tpu.memory_space<vmem>>, %arg5: memref<1x32xf32, #tpu.memory_space<vmem>>, %arg6: memref<16x32xf32, #tpu.memory_space<vmem>>) attributes {dimension_semantics = [#tpu.dimension_semantics<parallel>], iteration_bounds = array<i64: 1>, scalar_prefetch = 0 : i64, scratch_operands = 0 : i64, tpu.core_type = #tpu.core_type<tc>, window_params = [{transform_indices = @transform_0, window_bounds = array<i64: 16, 32>}, {pipeline_mode = #tpu.pipeline_mode<synchronous>, transform_indices = @transform_1, window_bounds = array<i64: 32, 64>}, {pipeline_mode = #tpu.pipeline_mode<synchronous>, transform_indices = @transform_2, window_bounds = array<i64: 1, 64>}, {pipeline_mode = #tpu.pipeline_mode<synchronous>, transform_indices = @transform_3, window_bounds = array<i64: 64, 32>}, {pipeline_mode = #tpu.pipeline_mode<synchronous>, transform_indices = @transform_4, window_bounds = array<i64: 1, 32>}, {transform_indices = @transform_5, window_bounds = array<i64: 16, 32>}]} {
    %c0 = arith.constant 0 : index
    %c0_0 = arith.constant 0 : index
    %0 = vector.load %arg1[%c0, %c0_0] : memref<16x32xf32, #tpu.memory_space<vmem>>, vector<16x32xf32>
    %c0_1 = arith.constant 0 : index
    %c0_2 = arith.constant 0 : index
    %1 = vector.load %arg2[%c0_1, %c0_2] : memref<32x64xf32, #tpu.memory_space<vmem>>, vector<32x64xf32>
    %cst = arith.constant dense<0.000000e+00> : vector<16x64xf32>
    %2 = tpu.matmul %0, %1, %cst {dimension_numbers = #tpu.dot_dimension_numbers<[1], [0], [0], [1], [0, 0, 1, 1], [], []>} : vector<16x32xf32>, vector<32x64xf32>, vector<16x64xf32> -> vector<16x64xf32>
    %c0_3 = arith.constant 0 : index
    %c0_4 = arith.constant 0 : index
    %3 = vector.load %arg3[%c0_3, %c0_4] : memref<1x64xf32, #tpu.memory_space<vmem>>, vector<1x64xf32>
    %4 = vector.broadcast %3 : vector<1x64xf32> to vector<16x64xf32>
    %5 = arith.addf %2, %4 : vector<16x64xf32>
    %6 = arith.mulf %5, %5 : vector<16x64xf32>
    %cst_5 = arith.constant 5.000000e-01 : f32
    %7 = vector.broadcast %cst_5 : f32 to vector<16x64xf32>
    %8 = arith.mulf %7, %5 : vector<16x64xf32>
    %9 = arith.mulf %6, %5 : vector<16x64xf32>
    %cst_6 = arith.constant 4.471500e-02 : f32
    %10 = vector.broadcast %cst_6 : f32 to vector<16x64xf32>
    %11 = arith.mulf %10, %9 : vector<16x64xf32>
    %12 = arith.addf %5, %11 : vector<16x64xf32>
    %cst_7 = arith.constant 0.797884583 : f32
    %13 = vector.broadcast %cst_7 : f32 to vector<16x64xf32>
    %14 = arith.mulf %13, %12 : vector<16x64xf32>
    %15 = math.tanh %14 : vector<16x64xf32>
    %cst_8 = arith.constant 1.000000e+00 : f32
    %16 = vector.broadcast %cst_8 : f32 to vector<16x64xf32>
    %17 = arith.addf %16, %15 : vector<16x64xf32>
    %18 = arith.mulf %8, %17 : vector<16x64xf32>
    %c0_9 = arith.constant 0 : index
    %c0_10 = arith.constant 0 : index
    %19 = vector.load %arg4[%c0_9, %c0_10] : memref<64x32xf32, #tpu.memory_space<vmem>>, vector<64x32xf32>
    %cst_11 = arith.constant dense<0.000000e+00> : vector<16x32xf32>
    %20 = tpu.matmul %18, %19, %cst_11 {dimension_numbers = #tpu.dot_dimension_numbers<[1], [0], [0], [1], [0, 0, 1, 1], [], []>} : vector<16x64xf32>, vector<64x32xf32>, vector<16x32xf32> -> vector<16x32xf32>
    %c0_12 = arith.constant 0 : index
    %c0_13 = arith.constant 0 : index
    %21 = vector.load %arg5[%c0_12, %c0_13] : memref<1x32xf32, #tpu.memory_space<vmem>>, vector<1x32xf32>
    %22 = vector.broadcast %21 : vector<1x32xf32> to vector<16x32xf32>
    %23 = arith.addf %20, %22 : vector<16x32xf32>
    %c0_14 = arith.constant 0 : index
    %c0_15 = arith.constant 0 : index
    %24 = vector.load %arg6[%c0_14, %c0_15] : memref<16x32xf32, #tpu.memory_space<vmem>>, vector<16x32xf32>
    tpu.vector_store %arg6[%c0_14, %c0_15], %23 {strides = array<i32>} : memref<16x32xf32, #tpu.memory_space<vmem>>, vector<16x32xf32>,
    return
  }
  func.func @transform_0(%arg0: i32) -> (i32, i32) {
    %c0_i32 = arith.constant 0 : i32
    %c0_i32_0 = arith.constant 0 : i32
    return %arg0, %c0_i32 : i32, i32
  }
  func.func @transform_1(%arg0: i32) -> (i32, i32) {
    %c0_i32 = arith.constant 0 : i32
    %c0_i32_0 = arith.constant 0 : i32
    %c0_i32_1 = arith.constant 0 : i32
    return %c0_i32, %c0_i32_0 : i32, i32
  }
  func.func @transform_2(%arg0: i32) -> (i32, i32) {
    %c0_i32 = arith.constant 0 : i32
    %c0_i32_0 = arith.constant 0 : i32
    %c0_i32_1 = arith.constant 0 : i32
    return %c0_i32, %c0_i32_0 : i32, i32
  }
  func.func @transform_3(%arg0: i32) -> (i32, i32) {
    %c0_i32 = arith.constant 0 : i32
    %c0_i32_0 = arith.constant 0 : i32
    %c0_i32_1 = arith.constant 0 : i32
    return %c0_i32, %c0_i32_0 : i32, i32
  }
  func.func @transform_4(%arg0: i32) -> (i32, i32) {
    %c0_i32 = arith.constant 0 : i32
    %c0_i32_0 = arith.constant 0 : i32
    %c0_i32_1 = arith.constant 0 : i32
    return %c0_i32, %c0_i32_0 : i32, i32
  }
  func.func @transform_5(%arg0: i32) -> (i32, i32) {
    %c0_i32 = arith.constant 0 : i32
    %c0_i32_0 = arith.constant 0 : i32
    return %arg0, %c0_i32 : i32, i32
  }
}

</mosaic_0001>

<bundles_post_ra>
// kernel: tpu_custom_call.1
= control target key start
LH: loop header
LB: loop body
LE: loop exit
PB: predicated region body
PF: predicated region fallthrough
CT: control target
= control target key end

     0   :  { %vm34_vm0 = vcmask 261120   ;;  %s418_s0 = inlined_call_operand.vmem [shape: f32[16,32], index: 0, kind: input, shape index: {}]   ;;  %s419_s1 = inlined_call_operand.vmem [shape: f32[32,64], index: 1, kind: input, shape index: {}]   ;;  %s420_s2 = inlined_call_operand.vmem [shape: f32[1,64], index: 2, kind: input, shape index: {}]   ;;  %s421_s3 = inlined_call_operand.vmem [shape: f32[64,32], index: 3, kind: input, shape index: {}]   ;;  %s422_s4 = inlined_call_operand.vmem [shape: f32[1,32], index: 4, kind: input, shape index: {}]   ;;  %s423_s5 = inlined_call_operand.hbm [shape: f32[16,32], index: 5, kind: output, shape index: {}]  }
   0x1   :  { %v26_v0 = vld [vmem:[%s419_s1 + $0x18] sm:$0xff]  ;;  %v25_v1 = vld [vmem:[%s419_s1 + $0x10] sm:$0xff]  ;;  %v21_v2 = vld [vmem:[%s418_s0] sm:$0xff] }
   0x2   :  { %271 = vmatprep.subr.mxu0 %v26_v0  ;;  %v24_v3 = vld [vmem:[%s419_s1 + $0x8] sm:$0xff]  ;;  %279 = vmatprep.mubr.msk.f32.mxu0 %vm34_vm0, %v21_v2 }
   0x3   :  { %272 = vmatpush3.msra.mxu0 %v26_v0 }
   0x4   :  { %10 = vsyncpa [#allocation3], 0  ;;  %273 = vmatprep.subr.mxu0 %v25_v1  ;;  %v23_v4 = vld [vmem:[%s419_s1] sm:$0xff]  ;;  %v22_v5 = vld [vmem:[%s418_s0 + $0x8] sm:$0xff]  ;;  %vm149_vm1 = vcmask 523264   ;;  %s330_s21 = smov [#allocation2]  }
   0x5   :  { %274 = vmatpush3.msra.mxu0 %v25_v1  ;;  %v141_v6 = vld [vmem:[%s421_s3 + $0x38] sm:$0xff]  ;;  %v140_v7 = vld [vmem:[%s421_s3 + $0x30] sm:$0xff]  ;;  %v139_v8 = vld [vmem:[%s421_s3 + $0x28] sm:$0xff]  ;;  %s238_s22 = sshll.u32 %s330_s21, 4  ;;  %s239_s22 = int_to_ptr.vmem [resolvable:$true] %s238_s22 }
   0x6   :  { %275 = vmatprep.subr.mxu0 %v24_v3  ;;  %282 = vmatprep.subr.mxu1 %v141_v6  ;;  %v138_v9 = vld [vmem:[%s421_s3 + $0x20] sm:$0xff]  ;;  %v137_v10 = vld [vmem:[%s421_s3 + $0x18] sm:$0xff]  ;;  %v136_v11 = vld [vmem:[%s421_s3 + $0x10] sm:$0xff]  ;;  %s308_s23 = scalar_lea.vmem %s239_s22, 256  ;;  %p313_p1 = scmp.lt.s32.totalorder %s239_s22, %s239_s22 }
   0x7   :  { %276 = vmatpush3.msra.mxu0 %v24_v3  ;;  %283 = vmatpush3.msra.mxu1 %v141_v6  ;;  %v135_v12 = vld [vmem:[%s421_s3 + $0x8] sm:$0xff]  ;;  %v134_v13 = vld [vmem:[%s421_s3] sm:$0xff]  ;;  %p309_p0 = scmp.ne.s32.totalorder %s239_s22, %s308_s23  ;;  %p314_p2 = scmp.lt.s32.totalorder %s308_s23, %s308_s23 }
   0x8   :  { %277 = vmatprep.subr.mxu0 %v23_v4  ;;  %284 = vmatprep.subr.mxu1 %v140_v7  ;;  %v249_v14 = vld [vmem:[%s420_s2] ss:$0 sm:$0xff] }
   0x9   :  { %278 = vmatpush3.msra.mxu0 %v23_v4  ;;  %285 = vmatpush3.msra.mxu1 %v140_v7  ;;  %v252_v37 = vld [vmem:[%s422_s4] ss:$0 sm:$0xff]  ;;  %p315_p3 = por %p314_p2, %p313_p1 }
   0xa   :  { %280 = vmatmul.mubr.msk.f32.vlgmr.msra.gmra.mxu0 %vm34_vm0, %v22_v5  ;;  %286 = vmatprep.subr.mxu1 %v139_v8 }
   0xb   :  { %287 = vmatpush3.msra.mxu1 %v139_v8  ;;  %p316_p4 = pnand %p315_p3, %p309_p0 }
   0xc   :  { %288 = vmatprep.subr.mxu1 %v138_v9 }
   0xd   :  { %289 = vmatpush3.msra.mxu1 %v138_v9 }
   0xe   :  { %290 = vmatprep.subr.mxu1 %v137_v10 }
   0xf   :  { %291 = vmatpush3.msra.mxu1 %v137_v10 }
  0x10   :  { %292 = vmatprep.subr.mxu1 %v136_v11 }
  0x11   :  { %293 = vmatpush3.msra.mxu1 %v136_v11 }
  0x12   :  { %294 = vmatprep.subr.mxu1 %v135_v12 }
  0x13   :  { %295 = vmatpush3.msra.mxu1 %v135_v12 }
  0x14   :  { %296 = vmatprep.subr.mxu1 %v134_v13 }
  0x15   :  { %297 = vmatpush3.msra.mxu1 %v134_v13 }
  0xca   :  { %v281_v15 = vpop.f32.mrf.mxu0 }
  0xcb   :  { %v113_v16 = vadd.f32 %v281_v15, %v249_v14 }
  0xcc   :  { %v107_v17 = vpop.f32.mrf.mxu0 }
  0xcd   :  { %v117_v18 = vmul.f32 %v113_v16, %v113_v16  ;;  %v108_v19 = vadd.f32 %v249_v14, %v107_v17  ;;  %v119_v34 = vmul.f32 0.5, %v113_v16 }
  0xcf   :  { %v121_v20 = vmul.f32 %v117_v18, %v113_v16  ;;  %v116_v21 = vmul.f32 %v108_v19, %v108_v19  ;;  %v118_v32 = vmul.f32 0.5, %v108_v19 }
  0xd1   :  { %v123_v22 = vmul.f32 0.044715, %v121_v20  ;;  %v120_v23 = vmul.f32 %v116_v21, %v108_v19 }
  0xd3   :  { %v125_v24 = vadd.f32 %v123_v22, %v113_v16  ;;  %v122_v25 = vmul.f32 0.044715, %v120_v23 }
  0xd5   :  { %v127_v26 = vmul.f32 0.7978846, %v125_v24  ;;  %v124_v27 = vadd.f32 %v122_v25, %v108_v19 }
  0xd7   :  { %304 = vtanh.f32 %v127_v26  ;;  %v126_v28 = vmul.f32 0.7978846, %v124_v27 }
  0xd9   :  { %306 = vtanh.f32 %v126_v28 }
  0xe4   :  { %v305_v29 = vpop.eup %304 }
  0xe5   :  { %v131_v31 = vadd.f32 1.0, %v305_v29 }
  0xe6   :  { %v307_v30 = vpop.eup %306 }
  0xe7   :  { %v130_v33 = vadd.f32 1.0, %v307_v30  ;;  %v133_v36 = vmul.f32 %v131_v31, %v119_v34 }
  0xe9   :  { %v132_v35 = vmul.f32 %v130_v33, %v118_v32 }
  0xeb   :  { %298 = vmatprep.mubr.msk.f32.mxu1 %vm149_vm1, %v132_v35 }
  0xec   :  { %299 = vmatmul.mubr.msk.f32.vlgmr.msra.gmra.mxu1 %vm149_vm1, %v133_v36 }
 0x1ac   :  { %v300_v38 = vpop.f32.mrf.mxu1 }
 0x1ad   :  { %v228_v39 = vadd.f32 %v300_v38, %v252_v37 }
 0x1ae   :  { %v222_v40 = vpop.f32.mrf.mxu1 }
 0x1af   :  { %232 = vst.msk [vmem:[#allocation2 + $0x8] sm:$0xff] %vm34_vm0, %v228_v39  ;;  %v223_v41 = vadd.f32 %v252_v37, %v222_v40 }
 0x1b1   :  { %231 = vst.msk [vmem:[#allocation2] sm:$0xff] %vm34_vm0, %v223_v41 }
 0x1b2   :  { %319 = shalt.err (!%p316_p4)
}
 0x1b3   :  { %s331_s24 = smov 128   ;;  %s332_s4 = smov 8  }
 0x1b4   :  { %244 = dma.vmem_to_hbm [thread:$0]  %s239_s22, 256, %s423_s5, [#allocation3], %s331_s24, %s331_s24, %s332_s4  }
 0x1b5   :  { %328 = dma.done.wait [#allocation3], 256  }
 0x1b6   :  { %329 = vsyncadd [#allocation3], 4294967040 }
 0x1b7   :  { %248 = vsyncpa [#allocation3], 1 }

</bundles_post_ra>
